<compile_context>
chip_gen: v5e
topology: v5e:2x2
jax: 0.10.0
libtpu: 0.0.40
codegen_flags: <defaults>
</compile_context>

<pallas_src>
import functools

import jax
import jax.numpy as jnp
from jax.experimental import pallas as pl
from jax.experimental.pallas import tpu as pltpu

IN_DIM = 28 * 28     # 784
HID = 256
OUT_DIM = 10
OUT_PAD = 128        # lane-dense padded output width (sliced back to 10)
N_DD_ITERS = 4
DEFAULT_TB = 512     # batch rows per grid step


def _round_up(n, m):
    return ((n + m - 1) // m) * m


def resdd_kernel(x_ref, w0_ref, wdd_ref, w2_ref, o_ref):
    """One batch tile of the full forward pass.

    x_ref:   (TB, 784)  bf16  - streamed per grid step
    w0_ref:  (784, 256) bf16  - VMEM-resident (constant block index)
    wdd_ref: (256, 256) bf16  - VMEM-resident
    w2_ref:  (256, 128) bf16  - VMEM-resident (zero-padded from 10 cols)
    o_ref:   (TB, 128)  f32   - lane-dense output tile
    """
    w0 = w0_ref[...]
    wdd = wdd_ref[...]
    w2 = w2_ref[...]
    tb = x_ref.shape[0]

    # fc0: bf16 @ bf16 -> f32 accumulate on the MXU.
    x = jnp.dot(x_ref[...], w0, preferred_element_type=jnp.float32)

    if tb >= 256:
        # The dd loop is otherwise a strict MXU -> VPU -> MXU dependency chain;
        # interleave two independent, sublane-aligned row halves so one half's
        # elementwise update overlaps the other half's matmul / MRF drain.
        h = (tb // 2) // 8 * 8
        xa, xb = x[:h], x[h:]
        for _ in range(N_DD_ITERS):
            ga = jnp.dot(xa.astype(jnp.bfloat16), wdd,
                         preferred_element_type=jnp.float32)
            gb = jnp.dot(xb.astype(jnp.bfloat16), wdd,
                         preferred_element_type=jnp.float32)
            xa = ga * xa + ga          # f32 VPU update
            xb = gb * xb + gb
        o_ref[:h, :] = jnp.dot(xa.astype(jnp.bfloat16), w2,
                               preferred_element_type=jnp.float32
                               ).astype(o_ref.dtype)
        o_ref[h:, :] = jnp.dot(xb.astype(jnp.bfloat16), w2,
                               preferred_element_type=jnp.float32
                               ).astype(o_ref.dtype)
    else:
        for _ in range(N_DD_ITERS):
            g = jnp.dot(x.astype(jnp.bfloat16), wdd,
                        preferred_element_type=jnp.float32)
            x = g * x + g              # f32 VPU update
        o_ref[...] = jnp.dot(x.astype(jnp.bfloat16), w2,
                             preferred_element_type=jnp.float32
                             ).astype(o_ref.dtype)


@functools.partial(jax.jit, static_argnames=("tb",))
def resdd_net_a(x, w0, wdd, w2, *, tb=DEFAULT_TB):
    """x: (B, 784) f32; w0: (784,256); wdd: (256,256); w2: (256,10) -> (B,10) f32."""
    B = x.shape[0]
    tb = min(tb, _round_up(B, 8))           # small-batch fallback
    bp = _round_up(B, tb)                   # padded batch (multiple of tile)
    num_tiles = bp // tb

    # bf16 inputs/weights: half the HBM traffic, native MXU rate.
    x_bf = x.astype(jnp.bfloat16)
    if bp != B:
        x_bf = jnp.pad(x_bf, ((0, bp - B), (0, 0)))
    w0_bf = w0.astype(jnp.bfloat16)
    wdd_bf = wdd.astype(jnp.bfloat16)
    # Zero-pad fc2 to 128 output lanes -> unmasked, lane-dense stores.
    w2_bf = jnp.pad(w2.astype(jnp.bfloat16), ((0, 0), (0, OUT_PAD - OUT_DIM)))

    flops = 2 * bp * (IN_DIM * HID + N_DD_ITERS * HID * HID + HID * OUT_PAD)
    bytes_accessed = (x_bf.size * 2 + w0_bf.size * 2 + wdd_bf.size * 2
                      + w2_bf.size * 2 + bp * OUT_PAD * 4)

    grid_spec = pl.GridSpec(
        grid=(num_tiles,),
        in_specs=[
            pl.BlockSpec((tb, IN_DIM), lambda i: (i, 0)),    # x streams
            pl.BlockSpec((IN_DIM, HID), lambda i: (0, 0)),   # weights stay resident
            pl.BlockSpec((HID, HID), lambda i: (0, 0)),
            pl.BlockSpec((HID, OUT_PAD), lambda i: (0, 0)),
        ],
        out_specs=pl.BlockSpec((tb, OUT_PAD), lambda i: (i, 0)),
    )

    out_padded = pl.pallas_call(
        resdd_kernel,
        out_shape=jax.ShapeDtypeStruct((bp, OUT_PAD), jnp.float32),
        grid_spec=grid_spec,
        compiler_params=pltpu.CompilerParams(
            dimension_semantics=("parallel",)),   # megacore shard on v7x
        cost_estimate=pl.CostEstimate(
            flops=flops, transcendentals=0, bytes_accessed=bytes_accessed),
    )(x_bf, w0_bf, wdd_bf, w2_bf)

    return out_padded[:B, :OUT_DIM]


def reference_f32(x, w0, wdd, w2):
    """Pure-f32 reference of the PyTorch forward."""
    h = x @ w0
    for _ in range(N_DD_ITERS):
        g = h @ wdd
        h = g * h + g
    return h @ w2


def reference_bf16_path(x, w0, wdd, w2):
    """Mimics the kernel's mixed precision (bf16 MXU operands, f32 accumulate)."""
    bf = jnp.bfloat16
    w0b, wddb, w2b = w0.astype(bf), wdd.astype(bf), w2.astype(bf)
    h = jnp.dot(x.astype(bf), w0b, preferred_element_type=jnp.float32)
    for _ in range(N_DD_ITERS):
        g = jnp.dot(h.astype(bf), wddb, preferred_element_type=jnp.float32)
        h = g * h + g
    return jnp.dot(h.astype(bf), w2b, preferred_element_type=jnp.float32)


if __name__ == "__main__":
    key = jax.random.PRNGKey(0)
    k_x, k_w0, k_wdd, k_w2 = jax.random.split(key, 4)

    B = 8
    x = jax.random.normal(k_x, (B, IN_DIM), dtype=jnp.float32)

    # Deterministic synthetic weights (scaled down so the 4 multiplicative
    # updates stay numerically tame). Stored as (in, out) = W_torch.T.
    w0 = jax.random.normal(k_w0, (IN_DIM, HID), dtype=jnp.float32) * 0.02
    wdd = jax.random.normal(k_wdd, (HID, HID), dtype=jnp.float32) * 0.02
    w2 = jax.random.normal(k_w2, (HID, OUT_DIM), dtype=jnp.float32) * 0.02

    out = jax.block_until_ready(resdd_net_a(x, w0, wdd, w2))
    assert out.shape == (B, OUT_DIM)

    # Tight check vs. a reference that uses the same bf16/f32 mixed precision.
    ref_mixed = reference_bf16_path(x, w0, wdd, w2)
    assert jnp.allclose(out, ref_mixed, rtol=1e-3, atol=1e-3), \
        "mismatch vs mixed-precision reference"

    # Loose check vs. the pure-f32 module semantics (bf16 rounding amplified by
    # the 4 multiplicative updates is well inside these bounds at this scale).
    ref_f32 = reference_f32(x, w0, wdd, w2)
    assert jnp.allclose(out, ref_f32, rtol=5e-2, atol=5e-2), \
        "mismatch vs f32 reference"

    print("KERNEL_OK")
</pallas_src>

<mosaic_0001>
module attributes {stable_mosaic.version = 11 : i64} {
  func.func @resdd_kernel(%arg0: i32, %arg1: memref<8x784xbf16, #tpu.memory_space<vmem>>, %arg2: memref<784x256xbf16, #tpu.memory_space<vmem>>, %arg3: memref<256x256xbf16, #tpu.memory_space<vmem>>, %arg4: memref<256x128xbf16, #tpu.memory_space<vmem>>, %arg5: memref<8x128xf32, #tpu.memory_space<vmem>>) attributes {dimension_semantics = [#tpu.dimension_semantics<parallel>], iteration_bounds = array<i64: 1>, scalar_prefetch = 0 : i64, scratch_operands = 0 : i64, tpu.core_type = #tpu.core_type<tc>, window_params = [{transform_indices = @transform_0, window_bounds = array<i64: 8, 784>}, {pipeline_mode = #tpu.pipeline_mode<synchronous>, transform_indices = @transform_1, window_bounds = array<i64: 784, 256>}, {pipeline_mode = #tpu.pipeline_mode<synchronous>, transform_indices = @transform_2, window_bounds = array<i64: 256, 256>}, {pipeline_mode = #tpu.pipeline_mode<synchronous>, transform_indices = @transform_3, window_bounds = array<i64: 256, 128>}, {transform_indices = @transform_4, window_bounds = array<i64: 8, 128>}]} {
    %c0 = arith.constant 0 : index
    %c0_0 = arith.constant 0 : index
    %0 = vector.load %arg2[%c0, %c0_0] : memref<784x256xbf16, #tpu.memory_space<vmem>>, vector<784x256xbf16>
    %c0_1 = arith.constant 0 : index
    %c0_2 = arith.constant 0 : index
    %1 = vector.load %arg3[%c0_1, %c0_2] : memref<256x256xbf16, #tpu.memory_space<vmem>>, vector<256x256xbf16>
    %c0_3 = arith.constant 0 : index
    %c0_4 = arith.constant 0 : index
    %2 = vector.load %arg4[%c0_3, %c0_4] : memref<256x128xbf16, #tpu.memory_space<vmem>>, vector<256x128xbf16>
    %c0_5 = arith.constant 0 : index
    %c0_6 = arith.constant 0 : index
    %3 = vector.load %arg1[%c0_5, %c0_6] : memref<8x784xbf16, #tpu.memory_space<vmem>>, vector<8x784xbf16>
    %cst = arith.constant dense<0.000000e+00> : vector<8x256xf32>
    %4 = tpu.matmul %3, %0, %cst {dimension_numbers = #tpu.dot_dimension_numbers<[1], [0], [0], [1], [0, 0, 1, 1], [], []>} : vector<8x784xbf16>, vector<784x256xbf16>, vector<8x256xf32> -> vector<8x256xf32>
    %5 = arith.truncf %4 : vector<8x256xf32> to vector<8x256xbf16>
    %cst_7 = arith.constant dense<0.000000e+00> : vector<8x256xf32>
    %6 = tpu.matmul %5, %1, %cst_7 {dimension_numbers = #tpu.dot_dimension_numbers<[1], [0], [0], [1], [0, 0, 1, 1], [], []>} : vector<8x256xbf16>, vector<256x256xbf16>, vector<8x256xf32> -> vector<8x256xf32>
    %7 = arith.mulf %6, %4 : vector<8x256xf32>
    %8 = arith.addf %7, %6 : vector<8x256xf32>
    %9 = arith.truncf %8 : vector<8x256xf32> to vector<8x256xbf16>
    %cst_8 = arith.constant dense<0.000000e+00> : vector<8x256xf32>
    %10 = tpu.matmul %9, %1, %cst_8 {dimension_numbers = #tpu.dot_dimension_numbers<[1], [0], [0], [1], [0, 0, 1, 1], [], []>} : vector<8x256xbf16>, vector<256x256xbf16>, vector<8x256xf32> -> vector<8x256xf32>
    %11 = arith.mulf %10, %8 : vector<8x256xf32>
    %12 = arith.addf %11, %10 : vector<8x256xf32>
    %13 = arith.truncf %12 : vector<8x256xf32> to vector<8x256xbf16>
    %cst_9 = arith.constant dense<0.000000e+00> : vector<8x256xf32>
    %14 = tpu.matmul %13, %1, %cst_9 {dimension_numbers = #tpu.dot_dimension_numbers<[1], [0], [0], [1], [0, 0, 1, 1], [], []>} : vector<8x256xbf16>, vector<256x256xbf16>, vector<8x256xf32> -> vector<8x256xf32>
    %15 = arith.mulf %14, %12 : vector<8x256xf32>
    %16 = arith.addf %15, %14 : vector<8x256xf32>
    %17 = arith.truncf %16 : vector<8x256xf32> to vector<8x256xbf16>
    %cst_10 = arith.constant dense<0.000000e+00> : vector<8x256xf32>
    %18 = tpu.matmul %17, %1, %cst_10 {dimension_numbers = #tpu.dot_dimension_numbers<[1], [0], [0], [1], [0, 0, 1, 1], [], []>} : vector<8x256xbf16>, vector<256x256xbf16>, vector<8x256xf32> -> vector<8x256xf32>
    %19 = arith.mulf %18, %16 : vector<8x256xf32>
    %20 = arith.addf %19, %18 : vector<8x256xf32>
    %21 = arith.truncf %20 : vector<8x256xf32> to vector<8x256xbf16>
    %cst_11 = arith.constant dense<0.000000e+00> : vector<8x128xf32>
    %22 = tpu.matmul %21, %2, %cst_11 {dimension_numbers = #tpu.dot_dimension_numbers<[1], [0], [0], [1], [0, 0, 1, 1], [], []>} : vector<8x256xbf16>, vector<256x128xbf16>, vector<8x128xf32> -> vector<8x128xf32>
    %c0_12 = arith.constant 0 : index
    %c0_13 = arith.constant 0 : index
    %23 = vector.load %arg5[%c0_12, %c0_13] : memref<8x128xf32, #tpu.memory_space<vmem>>, vector<8x128xf32>
    tpu.vector_store %arg5[%c0_12, %c0_13], %22 {strides = array<i32>} : memref<8x128xf32, #tpu.memory_space<vmem>>, vector<8x128xf32>,
    return
  }
  func.func @transform_0(%arg0: i32) -> (i32, i32) {
    %c0_i32 = arith.constant 0 : i32
    %c0_i32_0 = arith.constant 0 : i32
    return %arg0, %c0_i32 : i32, i32
  }
  func.func @transform_1(%arg0: i32) -> (i32, i32) {
    %c0_i32 = arith.constant 0 : i32
    %c0_i32_0 = arith.constant 0 : i32
    %c0_i32_1 = arith.constant 0 : i32
    return %c0_i32, %c0_i32_0 : i32, i32
  }
  func.func @transform_2(%arg0: i32) -> (i32, i32) {
    %c0_i32 = arith.constant 0 : i32
    %c0_i32_0 = arith.constant 0 : i32
    %c0_i32_1 = arith.constant 0 : i32
    return %c0_i32, %c0_i32_0 : i32, i32
  }
  func.func @transform_3(%arg0: i32) -> (i32, i32) {
    %c0_i32 = arith.constant 0 : i32
    %c0_i32_0 = arith.constant 0 : i32
    %c0_i32_1 = arith.constant 0 : i32
    return %c0_i32, %c0_i32_0 : i32, i32
  }
  func.func @transform_4(%arg0: i32) -> (i32, i32) {
    %c0_i32 = arith.constant 0 : i32
    %c0_i32_0 = arith.constant 0 : i32
    return %arg0, %c0_i32 : i32, i32
  }
}

</mosaic_0001>

<bundles_post_ra>
// kernel: resdd_net_a.1
= control target key start
LH: loop header
LB: loop body
LE: loop exit
PB: predicated region body
PF: predicated region fallthrough
CT: control target
= control target key end

     0   :  { %vm699_vm0 = vcmask 130048   ;;  %s3273_s0 = inlined_call_operand.vmem [shape: bf16[8,784], index: 0, kind: input, shape index: {}]   ;;  %s3274_s1 = inlined_call_operand.vmem [shape: bf16[784,256], index: 1, kind: input, shape index: {}]   ;;  %s3275_s2 = inlined_call_operand.vmem [shape: bf16[256,256], index: 2, kind: input, shape index: {}]   ;;  %s3276_s3 = inlined_call_operand.vmem [shape: bf16[256,128], index: 3, kind: input, shape index: {}]   ;;  %s3277_s4 = inlined_call_operand.hbm [shape: f32[8,128], index: 4, kind: output, shape index: {}]  }
   0x1   :  { %v1476_v0 = vld [vmem:[%s3274_s1 + $0x70] sm:$0xf]  ;;  %v2019_v1 = vld [vmem:[%s3274_s1 + $0x74] sm:$0xf0]  ;;  %v1468_v11 = vld [vmem:[%s3274_s1 + $0x60] sm:$0xf] }
   0x2   :  { %v1604_v2 = vld [vmem:[%s3274_s1 + $0x170] sm:$0xf]  ;;  %v1477_v3 = vor.u32 %v2019_v1, %v1476_v0  ;;  %v2051_v4 = vld [vmem:[%s3274_s1 + $0x174] sm:$0xf0]  ;;  %v2017_v13 = vld [vmem:[%s3274_s1 + $0x64] sm:$0xf0] }
   0x3   :  { %v1668_v5 = vld [vmem:[%s3274_s1 + $0x1f0] sm:$0xf]  ;;  %v2067_v6 = vld [vmem:[%s3274_s1 + $0x1f4] sm:$0xf0]  ;;  %v1605_v7 = vor.u32 %v2051_v4, %v1604_v2  ;;  %v1596_v14 = vld [vmem:[%s3274_s1 + $0x160] sm:$0xf]  ;;  %v1469_v16 = vor.u32 %v2017_v13, %v1468_v11 }
   0x4   :  { %v1669_v8 = vor.u32 %v2067_v6, %v1668_v5  ;;  %v1540_v9 = vld [vmem:[%s3274_s1 + $0xf0] sm:$0xf]  ;;  %v2035_v10 = vld [vmem:[%s3274_s1 + $0xf4] sm:$0xf0]  ;;  %703 = vmatpush.bf16.msra.mxu0 %v1477_v3  ;;  %v2049_v15 = vld [vmem:[%s3274_s1 + $0x164] sm:$0xf0] }
   0x5   :  { %v1541_v12 = vor.u32 %v2035_v10, %v1540_v9  ;;  %729 = vmatpush.bf16.msra.mxu2 %v1605_v7  ;;  %v1597_v17 = vor.u32 %v2049_v15, %v1596_v14  ;;  %v1660_v18 = vld [vmem:[%s3274_s1 + $0x1e0] sm:$0xf]  ;;  %v2065_v19 = vld [vmem:[%s3274_s1 + $0x1e4] sm:$0xf0]  ;;  %v1460_v23 = vld [vmem:[%s3274_s1 + $0x50] sm:$0xf] }
   0x6   :  { %742 = vmatpush.bf16.msra.mxu3 %v1669_v8  ;;  %v1532_v20 = vld [vmem:[%s3274_s1 + $0xe0] sm:$0xf]  ;;  %v1661_v21 = vor.u32 %v2065_v19, %v1660_v18  ;;  %v2033_v22 = vld [vmem:[%s3274_s1 + $0xe4] sm:$0xf0]  ;;  %v2015_v24 = vld [vmem:[%s3274_s1 + $0x54] sm:$0xf0] }
   0x7   :  { %716 = vmatpush.bf16.msra.mxu1 %v1541_v12  ;;  %v1533_v25 = vor.u32 %v2033_v22, %v1532_v20  ;;  %v1588_v26 = vld [vmem:[%s3274_s1 + $0x150] sm:$0xf]  ;;  %v2047_v27 = vld [vmem:[%s3274_s1 + $0x154] sm:$0xf0]  ;;  %v1461_v29 = vor.u32 %v2015_v24, %v1460_v23  ;;  %v1452_v35 = vld [vmem:[%s3274_s1 + $0x40] sm:$0xf] }
   0x8   :  { %v1652_v28 = vld [vmem:[%s3274_s1 + $0x1d0] sm:$0xf]  ;;  %704 = vmatpush.bf16.msra.mxu0 %v1469_v16  ;;  %v2063_v30 = vld [vmem:[%s3274_s1 + $0x1d4] sm:$0xf0]  ;;  %v1589_v33 = vor.u32 %v2047_v27, %v1588_v26  ;;  %v2013_v36 = vld [vmem:[%s3274_s1 + $0x44] sm:$0xf0] }
   0x9   :  { %v1524_v31 = vld [vmem:[%s3274_s1 + $0xd0] sm:$0xf]  ;;  %v2031_v32 = vld [vmem:[%s3274_s1 + $0xd4] sm:$0xf0]  ;;  %730 = vmatpush.bf16.msra.mxu2 %v1597_v17  ;;  %v1653_v34 = vor.u32 %v2063_v30, %v1652_v28  ;;  %v1580_v37 = vld [vmem:[%s3274_s1 + $0x140] sm:$0xf]  ;;  %v1453_v44 = vor.u32 %v2013_v36, %v1452_v35 }
   0xa   :  { %743 = vmatpush.bf16.msra.mxu3 %v1661_v21  ;;  %v1525_v38 = vor.u32 %v2031_v32, %v1524_v31  ;;  %v2045_v39 = vld [vmem:[%s3274_s1 + $0x144] sm:$0xf0]  ;;  %v1644_v40 = vld [vmem:[%s3274_s1 + $0x1c0] sm:$0xf]  ;;  %v1444_v47 = vld [vmem:[%s3274_s1 + $0x30] sm:$0xf] }
   0xb   :  { %717 = vmatpush.bf16.msra.mxu1 %v1533_v25  ;;  %v2061_v41 = vld [vmem:[%s3274_s1 + $0x1c4] sm:$0xf0]  ;;  %v1516_v42 = vld [vmem:[%s3274_s1 + $0xc0] sm:$0xf]  ;;  %v1581_v45 = vor.u32 %v2045_v39, %v1580_v37  ;;  %v2011_v48 = vld [vmem:[%s3274_s1 + $0x34] sm:$0xf0] }
   0xc   :  { %v2029_v43 = vld [vmem:[%s3274_s1 + $0xc4] sm:$0xf0]  ;;  %705 = vmatpush.bf16.msra.mxu0 %v1461_v29  ;;  %v1645_v46 = vor.u32 %v2061_v41, %v1644_v40  ;;  %v1572_v49 = vld [vmem:[%s3274_s1 + $0x130] sm:$0xf]  ;;  %v2043_v51 = vld [vmem:[%s3274_s1 + $0x134] sm:$0xf0]  ;;  %v1445_v56 = vor.u32 %v2011_v48, %v1444_v47 }
   0xd   :  { %731 = vmatpush.bf16.msra.mxu2 %v1589_v33  ;;  %v1517_v50 = vor.u32 %v2029_v43, %v1516_v42  ;;  %v1636_v52 = vld [vmem:[%s3274_s1 + $0x1b0] sm:$0xf]  ;;  %v2059_v53 = vld [vmem:[%s3274_s1 + $0x1b4] sm:$0xf0]  ;;  %v1573_v57 = vor.u32 %v2043_v51, %v1572_v49  ;;  %v1436_v59 = vld [vmem:[%s3274_s1 + $0x20] sm:$0xf] }
   0xe   :  { %744 = vmatpush.bf16.msra.mxu3 %v1653_v34  ;;  %v1508_v54 = vld [vmem:[%s3274_s1 + $0xb0] sm:$0xf]  ;;  %v2027_v55 = vld [vmem:[%s3274_s1 + $0xb4] sm:$0xf0]  ;;  %v1637_v58 = vor.u32 %v2059_v53, %v1636_v52  ;;  %v2009_v60 = vld [vmem:[%s3274_s1 + $0x24] sm:$0xf0] }
   0xf   :  { %718 = vmatpush.bf16.msra.mxu1 %v1525_v38  ;;  %v1564_v61 = vld [vmem:[%s3274_s1 + $0x120] sm:$0xf]  ;;  %v1509_v62 = vor.u32 %v2027_v55, %v1508_v54  ;;  %v2041_v63 = vld [vmem:[%s3274_s1 + $0x124] sm:$0xf0]  ;;  %v1437_v4 = vor.u32 %v2009_v60, %v1436_v59  ;;  %v1428_v7 = vld [vmem:[%s3274_s1 + $0x10] sm:$0xf] }
  0x10   :  { %706 = vmatpush.bf16.msra.mxu0 %v1453_v44  ;;  %v1628_v0 = vld [vmem:[%s3274_s1 + $0x1a0] sm:$0xf]  ;;  %v2057_v1 = vld [vmem:[%s3274_s1 + $0x1a4] sm:$0xf0]  ;;  %v1565_v5 = vor.u32 %v2041_v63, %v1564_v61  ;;  %v2007_v8 = vld [vmem:[%s3274_s1 + $0x14] sm:$0xf0] }
  0x11   :  { %732 = vmatpush.bf16.msra.mxu2 %v1581_v45  ;;  %v1500_v2 = vld [vmem:[%s3274_s1 + $0xa0] sm:$0xf]  ;;  %v2025_v3 = vld [vmem:[%s3274_s1 + $0xa4] sm:$0xf0]  ;;  %v1629_v6 = vor.u32 %v2057_v1, %v1628_v0  ;;  %v1556_v9 = vld [vmem:[%s3274_s1 + $0x110] sm:$0xf]  ;;  %v1429_v16 = vor.u32 %v2007_v8, %v1428_v7 }
  0x12   :  { %745 = vmatpush.bf16.msra.mxu3 %v1645_v46  ;;  %v1501_v10 = vor.u32 %v2025_v3, %v1500_v2  ;;  %v2039_v11 = vld [vmem:[%s3274_s1 + $0x114] sm:$0xf0]  ;;  %v1620_v12 = vld [vmem:[%s3274_s1 + $0x190] sm:$0xf]  ;;  %v1420_v17 = vld [vmem:[%s3274_s1] sm:$0xf] }
  0x13   :  { %719 = vmatpush.bf16.msra.mxu1 %v1517_v50  ;;  %v2055_v13 = vld [vmem:[%s3274_s1 + $0x194] sm:$0xf0]  ;;  %v1492_v14 = vld [vmem:[%s3274_s1 + $0x90] sm:$0xf]  ;;  %v2005_v18 = vld [vmem:[%s3274_s1 + $0x4] sm:$0xf0]  ;;  %v1557_v20 = vor.u32 %v2039_v11, %v1556_v9 }
  0x14   :  { %707 = vmatpush.bf16.msra.mxu0 %v1445_v56  ;;  %v2023_v15 = vld [vmem:[%s3274_s1 + $0x94] sm:$0xf0]  ;;  %v1548_v19 = vld [vmem:[%s3274_s1 + $0x100] sm:$0xf]  ;;  %v1621_v21 = vor.u32 %v2055_v13, %v1620_v12  ;;  %v2037_v22 = vld [vmem:[%s3274_s1 + $0x104] sm:$0xf0]  ;;  %v1421_v32 = vor.u32 %v2005_v18, %v1420_v17 }
  0x15   :  { %733 = vmatpush.bf16.msra.mxu2 %v1573_v57  ;;  %v1612_v23 = vld [vmem:[%s3274_s1 + $0x180] sm:$0xf]  ;;  %v182_v24 = vld [vmem:[%s3273_s0 + $0x8] sm:$0xff]  ;;  %v1493_v25 = vor.u32 %v2023_v15, %v1492_v14  ;;  %v1732_v27 = vld [vmem:[%s3274_s1 + $0x270] sm:$0xf]  ;;  %v1549_v37 = vor.u32 %v2037_v22, %v1548_v19 }
  0x16   :  { %746 = vmatpush.bf16.msra.mxu3 %v1637_v58  ;;  %v2053_v26 = vld [vmem:[%s3274_s1 + $0x184] sm:$0xf0]  ;;  %v2083_v28 = vld [vmem:[%s3274_s1 + $0x274] sm:$0xf0]  ;;  %v2018_v29 = vld [vmem:[%s3274_s1 + $0x74] sm:$0xf]  ;;  %v191_v34 = vunpack.c.l.b16 %v182_v24  ;;  %v192_v42 = vunpack.c.h.b16 %v182_v24 }
  0x17   :  { %720 = vmatpush.bf16.msra.mxu1 %v1509_v62  ;;  %v1478_v30 = vld [vmem:[%s3274_s1 + $0x78] sm:$0xf0]  ;;  %v1484_v31 = vld [vmem:[%s3274_s1 + $0x80] sm:$0xf]  ;;  %v2021_v33 = vld [vmem:[%s3274_s1 + $0x84] sm:$0xf0]  ;;  %v1613_v38 = vor.u32 %v2053_v26, %v1612_v23  ;;  %v1733_v43 = vor.u32 %v2083_v28, %v1732_v27 }
  0x18   :  { %708 = vmatpush.bf16.msra.mxu0 %v1437_v4  ;;  %v1804_v35 = vld [vmem:[%s3274_s1 + $0x300] sm:$0xf]  ;;  %v2101_v36 = vld [vmem:[%s3274_s1 + $0x304] sm:$0xf0]  ;;  %v1796_v39 = vld [vmem:[%s3274_s1 + $0x2f0] sm:$0xf]  ;;  %v1481_v44 = vor.u32 %v2018_v29, %v1478_v30  ;;  %v1485_v48 = vor.u32 %v2021_v33, %v1484_v31  ;;  %v2443_v53 = vpack.c.b16 %v191_v34, %v191_v34  ;;  %v2451_v60 = vpack.c.b16 %v192_v42, %v192_v42 }
  0x19   :  { %734 = vmatpush.bf16.msra.mxu2 %v1565_v5  ;;  %v2099_v40 = vld [vmem:[%s3274_s1 + $0x2f4] sm:$0xf0]  ;;  %v2034_v41 = vld [vmem:[%s3274_s1 + $0xf4] sm:$0xf]  ;;  %v1542_v45 = vld [vmem:[%s3274_s1 + $0xf8] sm:$0xf0]  ;;  %v1805_v49 = vor.u32 %v2101_v36, %v1804_v35 }
  0x1a   :  { %747 = vmatpush.bf16.msra.mxu3 %v1629_v6  ;;  %v1724_v46 = vld [vmem:[%s3274_s1 + $0x260] sm:$0xf]  ;;  %v2081_v47 = vld [vmem:[%s3274_s1 + $0x264] sm:$0xf0]  ;;  %v2016_v50 = vld [vmem:[%s3274_s1 + $0x64] sm:$0xf]  ;;  %v1797_v54 = vor.u32 %v2099_v40, %v1796_v39  ;;  %v1545_v57 = vor.u32 %v2034_v41, %v1542_v45 }
  0x1b   :  { %721 = vmatpush.bf16.msra.mxu1 %v1501_v10  ;;  %v1470_v51 = vld [vmem:[%s3274_s1 + $0x68] sm:$0xf0]  ;;  %v181_v52 = vld [vmem:[%s3273_s0] sm:$0xff]  ;;  %v2097_v59 = vld [vmem:[%s3274_s1 + $0x2e4] sm:$0xf0]  ;;  %v1725_v61 = vor.u32 %v2081_v47, %v1724_v46 }
  0x1c   :  { %709 = vmatpush.bf16.msra.mxu0 %v1429_v16  ;;  %v189_v55 = vunpack.c.l.b16 %v181_v52  ;;  %v190_v56 = vunpack.c.h.b16 %v181_v52  ;;  %v1788_v58 = vld [vmem:[%s3274_s1 + $0x2e0] sm:$0xf]  ;;  %v1473_v62 = vor.u32 %v2016_v50, %v1470_v51  ;;  %v2032_v63 = vld [vmem:[%s3274_s1 + $0xe4] sm:$0xf]  ;;  %v1534_v0 = vld [vmem:[%s3274_s1 + $0xe8] sm:$0xf0] }
  0x1d   :  { %735 = vmatpush.bf16.msra.mxu2 %v1557_v20  ;;  %v1716_v1 = vld [vmem:[%s3274_s1 + $0x250] sm:$0xf]  ;;  %v2079_v2 = vld [vmem:[%s3274_s1 + $0x254] sm:$0xf0]  ;;  %v2014_v3 = vld [vmem:[%s3274_s1 + $0x54] sm:$0xf]  ;;  %v1789_v7 = vor.u32 %v2097_v59, %v1788_v58  ;;  %v1537_v8 = vor.u32 %v2032_v63, %v1534_v0 }
  0x1e   :  { %748 = vmatpush.bf16.msra.mxu3 %v1621_v21  ;;  %v1462_v4 = vld [vmem:[%s3274_s1 + $0x58] sm:$0xf0]  ;;  %v2471_v5 = vpack.c.b16 %v189_v55, %v189_v55  ;;  %v2473_v6 = vpack.c.b16 %v190_v56, %v190_v56  ;;  %v1780_v9 = vld [vmem:[%s3274_s1 + $0x2d0] sm:$0xf]  ;;  %v2095_v10 = vld [vmem:[%s3274_s1 + $0x2d4] sm:$0xf0]  ;;  %v1717_v11 = vor.u32 %v2079_v2, %v1716_v1 }
  0x1f   :  { %722 = vmatpush.bf16.msra.mxu1 %v1493_v25  ;;  %v1465_v12 = vor.u32 %v2014_v3, %v1462_v4  ;;  %v2030_v13 = vld [vmem:[%s3274_s1 + $0xd4] sm:$0xf]  ;;  %v1526_v14 = vld [vmem:[%s3274_s1 + $0xd8] sm:$0xf0]  ;;  %v1708_v15 = vld [vmem:[%s3274_s1 + $0x240] sm:$0xf]  ;;  %v1781_v19 = vor.u32 %v2095_v10, %v1780_v9 }
  0x20   :  { %710 = vmatpush.bf16.msra.mxu0 %v1421_v32  ;;  %v2077_v16 = vld [vmem:[%s3274_s1 + $0x244] sm:$0xf0]  ;;  %v2012_v17 = vld [vmem:[%s3274_s1 + $0x44] sm:$0xf]  ;;  %v1454_v18 = vld [vmem:[%s3274_s1 + $0x48] sm:$0xf0]  ;;  %v1529_v20 = vor.u32 %v2030_v13, %v1526_v14 }
  0x21   :  { %736 = vmatpush.bf16.msra.mxu2 %v1549_v37  ;;  %v1772_v21 = vld [vmem:[%s3274_s1 + $0x2c0] sm:$0xf]  ;;  %v2093_v22 = vld [vmem:[%s3274_s1 + $0x2c4] sm:$0xf0]  ;;  %v2028_v23 = vld [vmem:[%s3274_s1 + $0xc4] sm:$0xf]  ;;  %v1709_v24 = vor.u32 %v2077_v16, %v1708_v15  ;;  %v1457_v25 = vor.u32 %v2012_v17, %v1454_v18 }
  0x22   :  { %749 = vmatpush.bf16.msra.mxu3 %v1613_v38  ;;  %v1518_v26 = vld [vmem:[%s3274_s1 + $0xc8] sm:$0xf0]  ;;  %v1700_v27 = vld [vmem:[%s3274_s1 + $0x230] sm:$0xf]  ;;  %v2075_v28 = vld [vmem:[%s3274_s1 + $0x234] sm:$0xf0]  ;;  %v1773_v32 = vor.u32 %v2093_v22, %v1772_v21 }
  0x23   :  { %723 = vmatpush.bf16.msra.mxu1 %v1485_v48  ;;  %711 = vmatmul.bf16.vlgmr.msra.gmra.mxu0 %v2471_v5  ;;  %v2010_v29 = vld [vmem:[%s3274_s1 + $0x34] sm:$0xf]  ;;  %v1446_v30 = vld [vmem:[%s3274_s1 + $0x38] sm:$0xf0]  ;;  %v184_v31 = vld [vmem:[%s3273_s0 + $0x18] sm:$0xf]  ;;  %v1521_v34 = vor.u32 %v2028_v23, %v1518_v26  ;;  %v1701_v37 = vor.u32 %v2075_v28, %v1700_v27 }
  0x24   :  { %755 = vmatpush.bf16.msrb.mxu0 %v1733_v43  ;;  %737 = vmatmul.bf16.vlgmr.msra.gmra.mxu2 %v2443_v53  ;;  %v195_v33 = vunpack.c.l.b16 %v184_v31  ;;  %v1764_v35 = vld [vmem:[%s3274_s1 + $0x2b0] sm:$0xf]  ;;  %v2091_v36 = vld [vmem:[%s3274_s1 + $0x2b4] sm:$0xf0]  ;;  %v1449_v38 = vor.u32 %v2010_v29, %v1446_v30  ;;  %v2026_v39 = vld [vmem:[%s3274_s1 + $0xb4] sm:$0xf] }
  0x25   :  { %788 = vmatpush.bf16.msrb.mxu2 %v1805_v49  ;;  %750 = vmatmul.bf16.vlgmr.msra.gmra.mxu3 %v2451_v60  ;;  %v1510_v40 = vld [vmem:[%s3274_s1 + $0xb8] sm:$0xf0]  ;;  %v1692_v41 = vld [vmem:[%s3274_s1 + $0x220] sm:$0xf]  ;;  %v2073_v42 = vld [vmem:[%s3274_s1 + $0x224] sm:$0xf0]  ;;  %v1765_v45 = vor.u32 %v2091_v36, %v1764_v35 }
  0x26   :  { %794 = vmatpush.bf16.msrb.mxu3 %v1481_v44  ;;  %724 = vmatmul.bf16.vlgmr.msra.gmra.mxu1 %v2473_v6  ;;  %v2008_v43 = vld [vmem:[%s3274_s1 + $0x24] sm:$0xf]  ;;  %v1438_v44 = vld [vmem:[%s3274_s1 + $0x28] sm:$0xf0]  ;;  %v2554_v46 = vpack.c.b16 %v195_v33, %v195_v33  ;;  %v1513_v47 = vor.u32 %v2026_v39, %v1510_v40  ;;  %v1756_v48 = vld [vmem:[%s3274_s1 + $0x2a0] sm:$0xf]  ;;  %v1693_v50 = vor.u32 %v2073_v42, %v1692_v41 }
  0x27   :  { %768 = vmatpush.bf16.msrb.mxu1 %v1797_v54  ;;  %v2089_v49 = vld [vmem:[%s3274_s1 + $0x2a4] sm:$0xf0]  ;;  %v1441_v51 = vor.u32 %v2008_v43, %v1438_v44  ;;  %v2024_v52 = vld [vmem:[%s3274_s1 + $0xa4] sm:$0xf]  ;;  %v1502_v54 = vld [vmem:[%s3274_s1 + $0xa8] sm:$0xf0] }
  0x28   :  { %756 = vmatpush.bf16.msrb.mxu0 %v1725_v61  ;;  %v1684_v55 = vld [vmem:[%s3274_s1 + $0x210] sm:$0xf]  ;;  %v2071_v56 = vld [vmem:[%s3274_s1 + $0x214] sm:$0xf0]  ;;  %v1430_v58 = vld [vmem:[%s3274_s1 + $0x18] sm:$0xf0]  ;;  %v1757_v59 = vor.u32 %v2089_v49, %v1756_v48 }
  0x29   :  { %807 = vmatpush.bf16.msra.mxu2 %v1545_v57  ;;  %v2006_v57 = vld [vmem:[%s3274_s1 + $0x14] sm:$0xf]  ;;  %v1748_v61 = vld [vmem:[%s3274_s1 + $0x290] sm:$0xf]  ;;  %v2087_v63 = vld [vmem:[%s3274_s1 + $0x294] sm:$0xf0]  ;;  %v1685_v2 = vor.u32 %v2071_v56, %v1684_v55 }
  0x2a   :  { %795 = vmatpush.bf16.msrb.mxu3 %v1473_v62  ;;  %v1505_v62 = vor.u32 %v2024_v52, %v1502_v54  ;;  %v2022_v0 = vld [vmem:[%s3274_s1 + $0x94] sm:$0xf]  ;;  %v1494_v1 = vld [vmem:[%s3274_s1 + $0x98] sm:$0xf0]  ;;  %v1433_v3 = vor.u32 %v2006_v57, %v1430_v58  ;;  %v1676_v4 = vld [vmem:[%s3274_s1 + $0x200] sm:$0xf] }
  0x2b   :  { %769 = vmatpush.bf16.msrb.mxu1 %v1789_v7  ;;  %v2069_v7 = vld [vmem:[%s3274_s1 + $0x204] sm:$0xf0]  ;;  %v2004_v9 = vld [vmem:[%s3274_s1 + $0x4] sm:$0xf]  ;;  %v1422_v10 = vld [vmem:[%s3274_s1 + $0x8] sm:$0xf0]  ;;  %v1497_v16 = vor.u32 %v2022_v0, %v1494_v1 }
  0x2c   :  { %757 = vmatpush.bf16.msrb.mxu0 %v1717_v11  ;;  %v2050_v11 = vld [vmem:[%s3274_s1 + $0x174] sm:$0xf]  ;;  %v1606_v13 = vld [vmem:[%s3274_s1 + $0x178] sm:$0xf0]  ;;  %v1740_v17 = vld [vmem:[%s3274_s1 + $0x280] sm:$0xf]  ;;  %v1425_v21 = vor.u32 %v2004_v9, %v1422_v10 }
  0x2d   :  { %808 = vmatpush.bf16.msra.mxu2 %v1537_v8  ;;  %v183_v8 = vld [vmem:[%s3273_s0 + $0x10] sm:$0xff]  ;;  %v1734_v15 = vld [vmem:[%s3274_s1 + $0x278] sm:$0xf0]  ;;  %v2085_v18 = vld [vmem:[%s3274_s1 + $0x284] sm:$0xf0] }
  0x2e   :  { %796 = vmatpush.bf16.msrb.mxu3 %v1465_v12  ;;  %v1749_v12 = vor.u32 %v2087_v63, %v1748_v61  ;;  %v2082_v14 = vld [vmem:[%s3274_s1 + $0x274] sm:$0xf]  ;;  %v2020_v22 = vld [vmem:[%s3274_s1 + $0x84] sm:$0xf]  ;;  %v1486_v23 = vld [vmem:[%s3274_s1 + $0x88] sm:$0xf0]  ;;  %v194_v30 = vunpack.c.h.b16 %v183_v8  ;;  %v1741_v31 = vor.u32 %v2085_v18, %v1740_v17 }
  0x2f   :  { %770 = vmatpush.bf16.msrb.mxu1 %v1781_v19  ;;  %v193_v19 = vunpack.c.l.b16 %v183_v8  ;;  %v1737_v26 = vor.u32 %v2082_v14, %v1734_v15  ;;  %v1670_v27 = vld [vmem:[%s3274_s1 + $0x1f8] sm:$0xf0]  ;;  %v2098_v28 = vld [vmem:[%s3274_s1 + $0x2f4] sm:$0xf]  ;;  %v1598_v33 = vld [vmem:[%s3274_s1 + $0x168] sm:$0xf0]  ;;  %v1489_v35 = vor.u32 %v2020_v22, %v1486_v23 }
  0x30   :  { %758 = vmatpush.bf16.msrb.mxu0 %v1709_v24  ;;  %v2066_v24 = vld [vmem:[%s3274_s1 + $0x1f4] sm:$0xf]  ;;  %v1798_v29 = vld [vmem:[%s3274_s1 + $0x2f8] sm:$0xf0]  ;;  %v2080_v36 = vld [vmem:[%s3274_s1 + $0x264] sm:$0xf]  ;;  %v2662_v41 = vpack.c.b16 %v194_v30, %v194_v30 }
  0x31   :  { %809 = vmatpush.bf16.msra.mxu2 %v1529_v20  ;;  %v1677_v20 = vor.u32 %v2069_v7, %v1676_v4  ;;  %v1801_v39 = vor.u32 %v2098_v28, %v1798_v29  ;;  %v2064_v40 = vld [vmem:[%s3274_s1 + $0x1e4] sm:$0xf]  ;;  %v1662_v43 = vld [vmem:[%s3274_s1 + $0x1e8] sm:$0xf0]  ;;  %v2046_v48 = vld [vmem:[%s3274_s1 + $0x154] sm:$0xf] }
  0x32   :  { %797 = vmatpush.bf16.msrb.mxu3 %v1457_v25  ;;  %v1609_v25 = vor.u32 %v2050_v11, %v1606_v13  ;;  %v2096_v44 = vld [vmem:[%s3274_s1 + $0x2e4] sm:$0xf]  ;;  %v1590_v49 = vld [vmem:[%s3274_s1 + $0x158] sm:$0xf0]  ;;  %v1665_v52 = vor.u32 %v2064_v40, %v1662_v43  ;;  %v2062_v55 = vld [vmem:[%s3274_s1 + $0x1d4] sm:$0xf] }
  0x33   :  { %771 = vmatpush.bf16.msrb.mxu1 %v1773_v32  ;;  %v2048_v32 = vld [vmem:[%s3274_s1 + $0x164] sm:$0xf]  ;;  %v1654_v56 = vld [vmem:[%s3274_s1 + $0x1d8] sm:$0xf0]  ;;  %v1593_v57 = vor.u32 %v2046_v48, %v1590_v49  ;;  %v2094_v58 = vld [vmem:[%s3274_s1 + $0x2d4] sm:$0xf] }
  0x34   :  { %759 = vmatpush.bf16.msrb.mxu0 %v1701_v37  ;;  %1810 = vmatmul.msk.bf16.vlgmr.msrb.gmra.mxu2 %vm699_vm0, %v2554_v46  ;;  %v1726_v37 = vld [vmem:[%s3274_s1 + $0x268] sm:$0xf0]  ;;  %v1601_v42 = vor.u32 %v2048_v32, %v1598_v33 }
  0x35   :  { %810 = vmatpush.bf16.msra.mxu2 %v1521_v34  ;;  %v2651_v34 = vpack.c.b16 %v193_v19, %v193_v19 }
  0x36   :  { %798 = vmatpush.bf16.msrb.mxu3 %v1449_v38  ;;  %v1673_v38 = vor.u32 %v2066_v24, %v1670_v27 }
  0x37   :  { %772 = vmatpush.bf16.msrb.mxu1 %v1765_v45  ;;  %v1790_v45 = vld [vmem:[%s3274_s1 + $0x2e8] sm:$0xf0] }
  0x38   :  { %760 = vmatpush.bf16.msrb.mxu0 %v1693_v50  ;;  %v2078_v50 = vld [vmem:[%s3274_s1 + $0x254] sm:$0xf]  ;;  %v1793_v54 = vor.u32 %v2096_v44, %v1790_v45 }
  0x39   :  { %811 = vmatpush.bf16.msra.mxu2 %v1513_v47  ;;  %v1729_v47 = vor.u32 %v2080_v36, %v1726_v37 }
  0x3a   :  { %799 = vmatpush.bf16.msrb.mxu3 %v1441_v51  ;;  %v1718_v51 = vld [vmem:[%s3274_s1 + $0x258] sm:$0xf0] }
  0x3b   :  { %773 = vmatpush.bf16.msrb.mxu1 %v1757_v59  ;;  %v1782_v59 = vld [vmem:[%s3274_s1 + $0x2d8] sm:$0xf0] }
  0x3c   :  { %761 = vmatpush.bf16.msrb.mxu0 %v1685_v2 }
  0x3d   :  { %812 = vmatpush.bf16.msra.mxu2 %v1505_v62 }
  0x3e   :  { %800 = vmatpush.bf16.msrb.mxu3 %v1433_v3 }
  0x3f   :  { %774 = vmatpush.bf16.msrb.mxu1 %v1749_v12 }
  0x40   :  { %762 = vmatpush.bf16.msrb.mxu0 %v1677_v20 }
  0x41   :  { %813 = vmatpush.bf16.msra.mxu2 %v1497_v16 }
  0x42   :  { %801 = vmatpush.bf16.msrb.mxu3 %v1425_v21 }
  0x43   :  { %775 = vmatpush.bf16.msrb.mxu1 %v1741_v31  ;;  %763 = vmatmul.bf16.vlgmr.msrb.gmra.mxu0 %v2651_v34 }
  0x44   :  { %820 = vmatpush.bf16.msra.mxu0 %v1609_v25 }
  0x45   :  { %814 = vmatpush.bf16.msra.mxu2 %v1489_v35 }
  0x46   :  { %846 = vmatpush.bf16.msra.mxu3 %v1737_v26  ;;  %776 = vmatmul.bf16.vlgmr.msrb.gmra.mxu1 %v2662_v41 }
  0x47   :  { %833 = vmatpush.bf16.msra.mxu1 %v1673_v38 }
  0x48   :  { %821 = vmatpush.bf16.msra.mxu0 %v1601_v42 }
  0x49   :  { %859 = vmatpush.bf16.msrb.mxu2 %v1801_v39 }
  0x4a   :  { %9 = vsyncpa [#allocation3], 0  ;;  %847 = vmatpush.bf16.msra.mxu3 %v1729_v47  ;;  %v1721_v61 = vor.u32 %v2078_v50, %v1718_v51  ;;  %v2044_v62 = vld [vmem:[%s3274_s1 + $0x144] sm:$0xf]  ;;  %v1582_v63 = vld [vmem:[%s3274_s1 + $0x148] sm:$0xf0]  ;;  %815 = vmatmul.bf16.vlgmr.msra.gmra.mxu2 %v2473_v6  ;;  %v1657_v2 = vor.u32 %v2062_v55, %v1654_v56  ;;  %v1785_v3 = vor.u32 %v2094_v58, %v1782_v59 }
  0x4b   :  { %v2076_v0 = vld [vmem:[%s3274_s1 + $0x244] sm:$0xf]  ;;  %v1710_v1 = vld [vmem:[%s3274_s1 + $0x248] sm:$0xf0]  ;;  %802 = vmatmul.bf16.vlgmr.msrb.gmra.mxu3 %v2471_v5  ;;  %834 = vmatpush.bf16.msra.mxu1 %v1665_v52  ;;  %v1585_v6 = vor.u32 %v2044_v62, %v1582_v63  ;;  %v2042_v10 = vld [vmem:[%s3274_s1 + $0x134] sm:$0xf] }
  0x4c   :  { %v2060_v4 = vld [vmem:[%s3274_s1 + $0x1c4] sm:$0xf]  ;;  %822 = vmatpush.bf16.msra.mxu0 %v1593_v57  ;;  %v1646_v7 = vld [vmem:[%s3274_s1 + $0x1c8] sm:$0xf0]  ;;  %v1713_v9 = vor.u32 %v2076_v0, %v1710_v1  ;;  %v1574_v11 = vld [vmem:[%s3274_s1 + $0x138] sm:$0xf0] }
  0x4d   :  { %860 = vmatpush.bf16.msrb.mxu2 %v1793_v54  ;;  %v2092_v8 = vld [vmem:[%s3274_s1 + $0x2c4] sm:$0xf]  ;;  %v1774_v5 = vld [vmem:[%s3274_s1 + $0x2c8] sm:$0xf0]  ;;  %v2074_v12 = vld [vmem:[%s3274_s1 + $0x234] sm:$0xf]  ;;  %v1649_v14 = vor.u32 %v2060_v4, %v1646_v7  ;;  %v1577_v17 = vor.u32 %v2042_v10, %v1574_v11 }
  0x4e   :  { %848 = vmatpush.bf16.msra.mxu3 %v1721_v61  ;;  %v1702_v13 = vld [vmem:[%s3274_s1 + $0x238] sm:$0xf0]  ;;  %v1777_v15 = vor.u32 %v2092_v8, %v1774_v5  ;;  %v2058_v16 = vld [vmem:[%s3274_s1 + $0x1b4] sm:$0xf]  ;;  %v2040_v22 = vld [vmem:[%s3274_s1 + $0x124] sm:$0xf] }
  0x4f   :  { %835 = vmatpush.bf16.msra.mxu1 %v1657_v2  ;;  %v1638_v18 = vld [vmem:[%s3274_s1 + $0x1b8] sm:$0xf0]  ;;  %v2090_v19 = vld [vmem:[%s3274_s1 + $0x2b4] sm:$0xf]  ;;  %v1705_v21 = vor.u32 %v2074_v12, %v1702_v13  ;;  %v1566_v23 = vld [vmem:[%s3274_s1 + $0x128] sm:$0xf0] }
  0x50   :  { %823 = vmatpush.bf16.msra.mxu0 %v1585_v6  ;;  %v1766_v20 = vld [vmem:[%s3274_s1 + $0x2b8] sm:$0xf0]  ;;  %v2072_v24 = vld [vmem:[%s3274_s1 + $0x224] sm:$0xf]  ;;  %v1694_v25 = vld [vmem:[%s3274_s1 + $0x228] sm:$0xf0]  ;;  %v1641_v26 = vor.u32 %v2058_v16, %v1638_v18  ;;  %v1569_v29 = vor.u32 %v2040_v22, %v1566_v23 }
  0x51   :  { %861 = vmatpush.bf16.msrb.mxu2 %v1785_v3  ;;  %v1769_v27 = vor.u32 %v2090_v19, %v1766_v20  ;;  %v2056_v28 = vld [vmem:[%s3274_s1 + $0x1a4] sm:$0xf]  ;;  %v1630_v30 = vld [vmem:[%s3274_s1 + $0x1a8] sm:$0xf0]  ;;  %v1697_v33 = vor.u32 %v2072_v24, %v1694_v25  ;;  %v2038_v35 = vld [vmem:[%s3274_s1 + $0x114] sm:$0xf] }
  0x52   :  { %849 = vmatpush.bf16.msra.mxu3 %v1713_v9  ;;  %v2088_v31 = vld [vmem:[%s3274_s1 + $0x2a4] sm:$0xf]  ;;  %v1758_v32 = vld [vmem:[%s3274_s1 + $0x2a8] sm:$0xf0]  ;;  %v1558_v36 = vld [vmem:[%s3274_s1 + $0x118] sm:$0xf0]  ;;  %v1633_v39 = vor.u32 %v2056_v28, %v1630_v30 }
  0x53   :  { %836 = vmatpush.bf16.msra.mxu1 %v1649_v14  ;;  %v2070_v37 = vld [vmem:[%s3274_s1 + $0x214] sm:$0xf]  ;;  %v1686_v38 = vld [vmem:[%s3274_s1 + $0x218] sm:$0xf0]  ;;  %v1761_v40 = vor.u32 %v2088_v31, %v1758_v32  ;;  %v1561_v43 = vor.u32 %v2038_v35, %v1558_v36  ;;  %v2036_v49 = vld [vmem:[%s3274_s1 + $0x104] sm:$0xf] }
  0x54   :  { %824 = vmatpush.bf16.msra.mxu0 %v1577_v17  ;;  %v2054_v42 = vld [vmem:[%s3274_s1 + $0x194] sm:$0xf]  ;;  %v1622_v44 = vld [vmem:[%s3274_s1 + $0x198] sm:$0xf0]  ;;  %v1689_v48 = vor.u32 %v2070_v37, %v1686_v38  ;;  %v1550_v50 = vld [vmem:[%s3274_s1 + $0x108] sm:$0xf0] }
  0x55   :  { %862 = vmatpush.bf16.msrb.mxu2 %v1777_v15  ;;  %v2086_v45 = vld [vmem:[%s3274_s1 + $0x294] sm:$0xf]  ;;  %v1750_v47 = vld [vmem:[%s3274_s1 + $0x298] sm:$0xf0]  ;;  %v2068_v51 = vld [vmem:[%s3274_s1 + $0x204] sm:$0xf]  ;;  %v1625_v56 = vor.u32 %v2054_v42, %v1622_v44  ;;  %v1553_v58 = vor.u32 %v2036_v49, %v1550_v50 }
  0x56   :  { %850 = vmatpush.bf16.msra.mxu3 %v1705_v21  ;;  %v1678_v52 = vld [vmem:[%s3274_s1 + $0x208] sm:$0xf0]  ;;  %v2100_v54 = vld [vmem:[%s3274_s1 + $0x304] sm:$0xf]  ;;  %v1753_v57 = vor.u32 %v2086_v45, %v1750_v47  ;;  %v1870_v4 = vld [vmem:[%s3275_s2 + $0x70] sm:$0xf] }
  0x57   :  { %837 = vmatpush.bf16.msra.mxu1 %v1641_v26  ;;  %v1806_v55 = vld [vmem:[%s3274_s1 + $0x308] sm:$0xf0]  ;;  %v2052_v59 = vld [vmem:[%s3274_s1 + $0x184] sm:$0xf]  ;;  %v1681_v62 = vor.u32 %v2068_v51, %v1678_v52  ;;  %v2117_v6 = vld [vmem:[%s3275_s2 + $0x74] sm:$0xf0] }
  0x58   :  { %825 = vmatpush.bf16.msra.mxu0 %v1569_v29  ;;  %v1614_v61 = vld [vmem:[%s3274_s1 + $0x188] sm:$0xf0]  ;;  %v2084_v63 = vld [vmem:[%s3274_s1 + $0x284] sm:$0xf]  ;;  %v1809_v1 = vor.u32 %v2100_v54, %v1806_v55  ;;  %v1854_v11 = vld [vmem:[%s3275_s2 + $0x50] sm:$0xf] }
  0x59   :  { %863 = vmatpush.bf16.msrb.mxu2 %v1769_v27  ;;  %v1742_v0 = vld [vmem:[%s3274_s1 + $0x288] sm:$0xf0]  ;;  %v1617_v2 = vor.u32 %v2052_v59, %v1614_v61  ;;  %v2114_v8 = vld [vmem:[%s3275_s2 + $0x64] sm:$0xf]  ;;  %v2113_v12 = vld [vmem:[%s3275_s2 + $0x54] sm:$0xf0] }
  0x5a   :  { %851 = vmatpush.bf16.msra.mxu3 %v1697_v33  ;;  %v1745_v3 = vor.u32 %v2084_v63, %v1742_v0  ;;  %v1864_v5 = vld [vmem:[%s3275_s2 + $0x68] sm:$0xf0]  ;;  %v2112_v13 = vld [vmem:[%s3275_s2 + $0x54] sm:$0xf]  ;;  %v2878_v14 = vor.u32 %v2113_v12, %v1854_v11  ;;  %v1856_v15 = vld [vmem:[%s3275_s2 + $0x58] sm:$0xf0] }
  0x5b   :  { %838 = vmatpush.bf16.msra.mxu1 %v1633_v39  ;;  %v2865_v10 = vor.u32 %v2114_v8, %v1864_v5  ;;  %v1846_v16 = vld [vmem:[%s3275_s2 + $0x40] sm:$0xf]  ;;  %v2111_v17 = vld [vmem:[%s3275_s2 + $0x44] sm:$0xf0]  ;;  %v2889_v18 = vor.u32 %v2112_v13, %v1856_v15  ;;  %v2110_v19 = vld [vmem:[%s3275_s2 + $0x44] sm:$0xf] }
  0x5c   :  { %826 = vmatpush.bf16.msra.mxu0 %v1561_v43  ;;  %v1848_v20 = vld [vmem:[%s3275_s2 + $0x48] sm:$0xf0]  ;;  %v2898_v21 = vor.u32 %v2111_v17, %v1846_v16  ;;  %v1838_v23 = vld [vmem:[%s3275_s2 + $0x30] sm:$0xf]  ;;  %v2109_v24 = vld [vmem:[%s3275_s2 + $0x34] sm:$0xf0] }
  0x5d   :  { %864 = vmatpush.bf16.msrb.mxu2 %v1761_v40  ;;  %v2901_v22 = vor.u32 %v2110_v19, %v1848_v20  ;;  %v2108_v25 = vld [vmem:[%s3275_s2 + $0x34] sm:$0xf]  ;;  %v1840_v26 = vld [vmem:[%s3275_s2 + $0x38] sm:$0xf0]  ;;  %v2916_v27 = vor.u32 %v2109_v24, %v1838_v23  ;;  %v1830_v29 = vld [vmem:[%s3275_s2 + $0x20] sm:$0xf] }
  0x5e   :  { %852 = vmatpush.bf16.msra.mxu3 %v1689_v48  ;;  %v2919_v28 = vor.u32 %v2108_v25, %v1840_v26  ;;  %v2107_v30 = vld [vmem:[%s3275_s2 + $0x24] sm:$0xf0]  ;;  %v2106_v31 = vld [vmem:[%s3275_s2 + $0x24] sm:$0xf]  ;;  %v1832_v32 = vld [vmem:[%s3275_s2 + $0x28] sm:$0xf0] }
  0x5f   :  { %839 = vmatpush.bf16.msra.mxu1 %v1625_v56  ;;  %v2934_v33 = vor.u32 %v2107_v30, %v1830_v29  ;;  %v2937_v35 = vor.u32 %v2106_v31, %v1832_v32  ;;  %v1822_v36 = vld [vmem:[%s3275_s2 + $0x10] sm:$0xf]  ;;  %v2105_v37 = vld [vmem:[%s3275_s2 + $0x14] sm:$0xf0]  ;;  %v2104_v38 = vld [vmem:[%s3275_s2 + $0x14] sm:$0xf] }
  0x60   :  { %827 = vmatpush.bf16.msra.mxu0 %v1553_v58  ;;  %v2950_v39 = vor.u32 %v2105_v37, %v1822_v36  ;;  %v1824_v40 = vld [vmem:[%s3275_s2 + $0x18] sm:$0xf0]  ;;  %v1814_v43 = vld [vmem:[%s3275_s2] sm:$0xf]  ;;  %v2103_v44 = vld [vmem:[%s3275_s2 + $0x4] sm:$0xf0] }
  0x61   :  { %865 = vmatpush.bf16.msrb.mxu2 %v1753_v57  ;;  %v2955_v42 = vor.u32 %v2104_v38, %v1824_v40  ;;  %v2102_v45 = vld [vmem:[%s3275_s2 + $0x4] sm:$0xf]  ;;  %v2968_v47 = vor.u32 %v2103_v44, %v1814_v43  ;;  %v1816_v48 = vld [vmem:[%s3275_s2 + $0x8] sm:$0xf0]  ;;  %v1934_v55 = vld [vmem:[%s3275_s2 + $0xf0] sm:$0xf] }
  0x62   :  { %853 = vmatpush.bf16.msra.mxu3 %v1681_v62  ;;  %v2973_v51 = vor.u32 %v2102_v45, %v1816_v48  ;;  %v2133_v56 = vld [vmem:[%s3275_s2 + $0xf4] sm:$0xf0]  ;;  %v2132_v57 = vld [vmem:[%s3275_s2 + $0xf4] sm:$0xf]  ;;  %v1936_v59 = vld [vmem:[%s3275_s2 + $0xf8] sm:$0xf0] }
  0x63   :  { %840 = vmatpush.bf16.msra.mxu1 %v1617_v2  ;;  %828 = vmatmul.bf16.vlgmr.msra.gmra.mxu0 %v2443_v53  ;;  %v2116_v53 = vld [vmem:[%s3275_s2 + $0x74] sm:$0xf]  ;;  %v2988_v58 = vor.u32 %v2133_v56, %v1934_v55  ;;  %v1926_v61 = vld [vmem:[%s3275_s2 + $0xe0] sm:$0xf]  ;;  %v2131_v62 = vld [vmem:[%s3275_s2 + $0xe4] sm:$0xf0]  ;;  %v3000_v63 = vor.u32 %v2132_v57, %v1936_v59 }
  0x64   :  { %879 = vmatpush.bf16.msrb.mxu0 %v1809_v1  ;;  %v2130_v0 = vld [vmem:[%s3275_s2 + $0xe4] sm:$0xf]  ;;  %v1928_v1 = vld [vmem:[%s3275_s2 + $0xe8] sm:$0xf0]  ;;  %v2128_v8 = vld [vmem:[%s3275_s2 + $0xd4] sm:$0xf] }
  0x65   :  { %854 = vmatmul.bf16.vlgmr.msra.gmra.mxu3 %v2651_v34  ;;  %866 = vmatpush.bf16.msrb.mxu2 %v1745_v3  ;;  %v2842_v34 = vor.u32 %v2117_v6, %v1870_v4  ;;  %v3010_v4 = vor.u32 %v2131_v62, %v1926_v61  ;;  %v3013_v6 = vor.u32 %v2130_v0, %v1928_v1  ;;  %v1920_v11 = vld [vmem:[%s3275_s2 + $0xd8] sm:$0xf0]  ;;  %v1910_v17 = vld [vmem:[%s3275_s2 + $0xc0] sm:$0xf]  ;;  %v2127_v19 = vld [vmem:[%s3275_s2 + $0xc4] sm:$0xf0] }
  0x66   :  { %841 = vmatmul.bf16.vlgmr.msra.gmra.mxu1 %v2451_v60  ;;  %v1872_v60 = vld [vmem:[%s3275_s2 + $0x78] sm:$0xf0]  ;;  %1060 = vmatpush.bf16.msrb.mxu3 %v2988_v58  ;;  %v3033_v12 = vor.u32 %v2128_v8, %v1920_v11  ;;  %v2126_v20 = vld [vmem:[%s3275_s2 + $0xc4] sm:$0xf]  ;;  %v3052_v23 = vor.u32 %v2127_v19, %v1910_v17  ;;  %v1912_v24 = vld [vmem:[%s3275_s2 + $0xc8] sm:$0xf0] }
  0x67   :  { %v2853_v7 = vor.u32 %v2116_v53, %v1872_v60  ;;  %1047 = vmatpush.bf16.msrb.mxu1 %v2842_v34  ;;  %v3057_v26 = vor.u32 %v2126_v20, %v1912_v24  ;;  %v1902_v32 = vld [vmem:[%s3275_s2 + $0xb0] sm:$0xf]  ;;  %v2125_v36 = vld [vmem:[%s3275_s2 + $0xb4] sm:$0xf0]  ;;  %v2124_v37 = vld [vmem:[%s3275_s2 + $0xb4] sm:$0xf] }
  0x68   :  { %867 = vmatmul.bf16.vlgmr.msrb.gmra.mxu2 %v2662_v41  ;;  %v2115_v41 = vld [vmem:[%s3275_s2 + $0x64] sm:$0xf0]  ;;  %v3072_v40 = vor.u32 %v2125_v36, %v1902_v32  ;;  %v1904_v43 = vld [vmem:[%s3275_s2 + $0xb8] sm:$0xf0]  ;;  %v1896_v55 = vld [vmem:[%s3275_s2 + $0xa8] sm:$0xf0] }
  0x69   :  { %1073 = vmatpush.bf16.msra.mxu0 %v2853_v7  ;;  %1086 = vmatpush.bf16.msra.mxu2 %v3000_v63  ;;  %v3077_v45 = vor.u32 %v2124_v37, %v1904_v43  ;;  %v1886_v62 = vld [vmem:[%s3275_s2 + $0x90] sm:$0xf]  ;;  %v2121_v0 = vld [vmem:[%s3275_s2 + $0x94] sm:$0xf0]  ;;  %v2120_v1 = vld [vmem:[%s3275_s2 + $0x94] sm:$0xf] }
  0x6a   :  { %1061 = vmatpush.bf16.msrb.mxu3 %v3010_v4  ;;  %v2119_v8 = vld [vmem:[%s3275_s2 + $0x84] sm:$0xf0]  ;;  %v2118_v11 = vld [vmem:[%s3275_s2 + $0x84] sm:$0xf]  ;;  %s1409_s13 = sshll.u32 %s3277_s4, 4  ;;  %s1410_s13 = int_to_ptr.hbm [resolvable:$true] %s1409_s13 }
  0x6d   :  { %1074 = vmatpush.bf16.msra.mxu0 %v2865_v10  ;;  %1087 = vmatpush.bf16.msra.mxu2 %v3013_v6 }
  0x71   :  { %1075 = vmatpush.bf16.msra.mxu0 %v2889_v18  ;;  %1088 = vmatpush.bf16.msra.mxu2 %v3033_v12 }
  0x73   :  { %1811 = vmatmul.msk.bf16.vlgmr.msrb.gmra.mxu0 %vm699_vm0, %v2554_v46  ;;  %v1862_v46 = vld [vmem:[%s3275_s2 + $0x60] sm:$0xf] }
  0x74   :  { %v2862_v9 = vor.u32 %v2115_v41, %v1862_v46  ;;  %v1918_v46 = vld [vmem:[%s3275_s2 + $0xd0] sm:$0xf]  ;;  %v2129_v41 = vld [vmem:[%s3275_s2 + $0xd4] sm:$0xf0] }
  0x75   :  { %1076 = vmatpush.bf16.msra.mxu0 %v2901_v22  ;;  %v3028_v5 = vor.u32 %v2129_v41, %v1918_v46  ;;  %1089 = vmatpush.bf16.msra.mxu2 %v3057_v26  ;;  %v1878_v41 = vld [vmem:[%s3275_s2 + $0x80] sm:$0xf] }
  0x76   :  { %1048 = vmatpush.bf16.msrb.mxu1 %v2862_v9 }
  0x77   :  { %1062 = vmatpush.bf16.msrb.mxu3 %v3028_v5 }
  0x79   :  { %1077 = vmatpush.bf16.msra.mxu0 %v2919_v28  ;;  %1090 = vmatpush.bf16.msra.mxu2 %v3077_v45 }
  0x7a   :  { %1049 = vmatpush.bf16.msrb.mxu1 %v2878_v14 }
  0x7b   :  { %1063 = vmatpush.bf16.msrb.mxu3 %v3052_v23 }
  0x7d   :  { %1078 = vmatpush.bf16.msra.mxu0 %v2937_v35 }
  0x7e   :  { %1050 = vmatpush.bf16.msrb.mxu1 %v2898_v21 }
  0x7f   :  { %1064 = vmatpush.bf16.msrb.mxu3 %v3072_v40 }
  0x81   :  { %1079 = vmatpush.bf16.msra.mxu0 %v2955_v42 }
  0x82   :  { %1051 = vmatpush.bf16.msrb.mxu1 %v2916_v27 }
  0x85   :  { %1080 = vmatpush.bf16.msra.mxu0 %v2973_v51 }
  0x86   :  { %1052 = vmatpush.bf16.msrb.mxu1 %v2934_v33 }
  0x89   :  { %1131 = vmatpush.bf16.msrb.mxu0 %v2853_v7 }
  0x8a   :  { %1053 = vmatpush.bf16.msrb.mxu1 %v2950_v39 }
  0x8d   :  { %1132 = vmatpush.bf16.msrb.mxu0 %v2865_v10 }
  0x8e   :  { %1054 = vmatpush.bf16.msrb.mxu1 %v2968_v47 }
  0x91   :  { %1133 = vmatpush.bf16.msrb.mxu0 %v2889_v18 }
  0x92   :  { %1105 = vmatpush.bf16.msra.mxu1 %v2842_v34 }
  0x95   :  { %1134 = vmatpush.bf16.msrb.mxu0 %v2901_v22 }
  0x96   :  { %1106 = vmatpush.bf16.msra.mxu1 %v2862_v9 }
  0x99   :  { %1135 = vmatpush.bf16.msrb.mxu0 %v2919_v28 }
  0x9a   :  { %1107 = vmatpush.bf16.msra.mxu1 %v2878_v14 }
  0x9d   :  { %1136 = vmatpush.bf16.msrb.mxu0 %v2937_v35 }
  0x9e   :  { %1108 = vmatpush.bf16.msra.mxu1 %v2898_v21 }
  0xa0   :  { %v712_v49 = vpop.f32.mrf.mxu0 }
  0xa1   :  { %1137 = vmatpush.bf16.msrb.mxu0 %v2955_v42 }
  0xa2   :  { %1109 = vmatpush.bf16.msra.mxu1 %v2916_v27 }
  0xa3   :  { %v725_v50 = vpop.f32.mrf.mxu1 }
  0xa4   :  { %v726_v13 = vadd.f32 %v725_v50, %v712_v49  ;;  %v1894_v49 = vld [vmem:[%s3275_s2 + $0xa0] sm:$0xf]  ;;  %v2123_v50 = vld [vmem:[%s3275_s2 + $0xa4] sm:$0xf0] }
  0xa5   :  { %1138 = vmatpush.bf16.msrb.mxu0 %v2973_v51 }
  0xa6   :  { %1110 = vmatpush.bf16.msra.mxu1 %v2934_v33 }
  0xa7   :  { %v738_v52 = vpop.f32.mrf.mxu2 }
  0xa8   :  { %v751_v54 = vpop.f32.mrf.mxu3  ;;  %v714_v2 = vpop.f32.mrf.mxu0  ;;  %v739_v16 = vadd.f32 %v738_v52, %v726_v13  ;;  %v2122_v52 = vld [vmem:[%s3275_s2 + $0xa4] sm:$0xf]  ;;  %v3134_v13 = vor.u32 %v2119_v8, %v1878_v41 }
  0xa9   :  { %v3101_v57 = vor.u32 %v2122_v52, %v1896_v55 }
  0xaa   :  { %v752_v25 = vadd.f32 %v751_v54, %v739_v16  ;;  %1111 = vmatpush.bf16.msra.mxu1 %v2950_v39  ;;  %v3094_v54 = vor.u32 %v2123_v50, %v1894_v49 }
  0xab   :  { %v727_v3 = vpop.f32.mrf.mxu1  ;;  %1091 = vmatpush.bf16.msra.mxu2 %v3101_v57 }
  0xac   :  { %1065 = vmatpush.bf16.msrb.mxu3 %v3094_v54 }
  0xae   :  { %1112 = vmatpush.bf16.msra.mxu1 %v2968_v47 }
  0xaf   :  { %v740_v53 = vpop.f32.mrf.mxu2 }
  0xb0   :  { %v753_v60 = vpop.f32.mrf.mxu3  ;;  %v3114_v53 = vor.u32 %v2121_v0, %v1886_v62 }
  0xb1   :  { %v1888_v60 = vld [vmem:[%s3275_s2 + $0x98] sm:$0xf0] }
  0xb2   :  { %v3120_v46 = vor.u32 %v2120_v1, %v1888_v60  ;;  %1066 = vmatpush.bf16.msrb.mxu3 %v3114_v53 }
  0xb4   :  { %1092 = vmatpush.bf16.msra.mxu2 %v3120_v46 }
  0xb6   :  { %1067 = vmatpush.bf16.msrb.mxu3 %v3134_v13 }
  0xb7   :  { %v790_v15 = vpop.f32.mrf.mxu2 }
  0xba   :  { %1118 = vmatpush.bf16.msra.mxu3 %v2988_v58 }
  0xbe   :  { %1119 = vmatpush.bf16.msra.mxu3 %v3010_v4 }
  0xbf   :  { %v792_v31 = vpop.f32.mrf.mxu2 }
  0xc0   :  { %v764_v29 = vpop.f32.mrf.mxu0 }
  0xc1   :  { %v765_v30 = vadd.f32 %v764_v29, %v752_v25 }
  0xc2   :  { %1120 = vmatpush.bf16.msra.mxu3 %v3028_v5 }
  0xc3   :  { %v777_v38 = vpop.f32.mrf.mxu1 }
  0xc4   :  { %v778_v44 = vadd.f32 %v777_v38, %v765_v30 }
  0xc6   :  { %v3081_v48 = vadd.f32 %v790_v15, %v778_v44  ;;  %v1880_v15 = vld [vmem:[%s3275_s2 + $0x88] sm:$0xf0]  ;;  %1121 = vmatpush.bf16.msra.mxu3 %v3052_v23 }
  0xc7   :  { %v3140_v16 = vor.u32 %v2118_v11, %v1880_v15 }
  0xc8   :  { %v885_v56 = vpack.c.bf16 %v3081_v48, %v3081_v48  ;;  %v766_v59 = vpop.f32.mrf.mxu0 }
  0xc9   :  { %1093 = vmatpush.bf16.msra.mxu2 %v3140_v16 }
  0xca   :  { %1055 = vmatmul.bf16.vlgmr.msrb.gmra.mxu1 %v885_v56  ;;  %1081 = vmatmul.bf16.vlgmr.msra.gmra.mxu0 %v885_v56 }
  0xcb   :  { %v779_v3 = vpop.f32.mrf.mxu1  ;;  %1163 = vmatpush.bf16.msrb.mxu1 %v2842_v34  ;;  %1189 = vmatpush.bf16.msra.mxu0 %v2853_v7 }
  0xcc   :  { %1122 = vmatpush.bf16.msra.mxu3 %v3072_v40 }
  0xcd   :  { %v816_v61 = vpop.f32.mrf.mxu2  ;;  %1144 = vmatpush.bf16.msrb.mxu2 %v3000_v63 }
  0xce   :  { %v803_v2 = vpop.f32.mrf.mxu3 }
  0xcf   :  { %1164 = vmatpush.bf16.msrb.mxu1 %v2862_v9  ;;  %1190 = vmatpush.bf16.msra.mxu0 %v2865_v10  ;;  %v817_v24 = vadd.f32 %v816_v61, %v803_v2 }
  0xd0   :  { %1123 = vmatpush.bf16.msra.mxu3 %v3094_v54 }
  0xd1   :  { %1145 = vmatpush.bf16.msrb.mxu2 %v3013_v6 }
  0xd3   :  { %1165 = vmatpush.bf16.msrb.mxu1 %v2878_v14  ;;  %1191 = vmatpush.bf16.msra.mxu0 %v2889_v18 }
  0xd4   :  { %1124 = vmatpush.bf16.msra.mxu3 %v3114_v53 }
  0xd5   :  { %v818_v17 = vpop.f32.mrf.mxu2  ;;  %1146 = vmatpush.bf16.msrb.mxu2 %v3033_v12 }
  0xd6   :  { %v805_v19 = vpop.f32.mrf.mxu3 }
  0xd7   :  { %1166 = vmatpush.bf16.msrb.mxu1 %v2898_v21  ;;  %1192 = vmatpush.bf16.msra.mxu0 %v2901_v22 }
  0xd8   :  { %1125 = vmatpush.bf16.msra.mxu3 %v3134_v13 }
  0xd9   :  { %1147 = vmatpush.bf16.msrb.mxu2 %v3057_v26 }
  0xdb   :  { %1167 = vmatpush.bf16.msrb.mxu1 %v2916_v27  ;;  %1193 = vmatpush.bf16.msra.mxu0 %v2919_v28 }
  0xdd   :  { %1148 = vmatpush.bf16.msrb.mxu2 %v3077_v45 }
  0xdf   :  { %1168 = vmatpush.bf16.msrb.mxu1 %v2934_v33  ;;  %1194 = vmatpush.bf16.msra.mxu0 %v2937_v35 }
  0xe0   :  { %v829_v20 = vpop.f32.mrf.mxu0 }
  0xe1   :  { %v830_v29 = vadd.f32 %v829_v20, %v817_v24  ;;  %1149 = vmatpush.bf16.msrb.mxu2 %v3101_v57 }
  0xe3   :  { %v842_v25 = vpop.f32.mrf.mxu1  ;;  %1169 = vmatpush.bf16.msrb.mxu1 %v2950_v39  ;;  %1195 = vmatpush.bf16.msra.mxu0 %v2955_v42 }
  0xe4   :  { %v843_v32 = vadd.f32 %v842_v25, %v830_v29 }
  0xe5   :  { %1150 = vmatpush.bf16.msrb.mxu2 %v3120_v46 }
  0xe7   :  { %1170 = vmatpush.bf16.msrb.mxu1 %v2968_v47  ;;  %1196 = vmatpush.bf16.msra.mxu0 %v2973_v51 }
  0xe8   :  { %v855_v30 = vpop.f32.mrf.mxu3  ;;  %v831_v31 = vpop.f32.mrf.mxu0 }
  0xe9   :  { %v856_v37 = vadd.f32 %v855_v30, %v843_v32  ;;  %1151 = vmatpush.bf16.msrb.mxu2 %v3140_v16 }
  0xeb   :  { %v868_v36 = vpop.f32.mrf.mxu2  ;;  %v844_v38 = vpop.f32.mrf.mxu1 }
  0xec   :  { %v869_v43 = vadd.f32 %v868_v36, %v856_v37  ;;  %v2137_v38 = vld [vmem:[%s3276_s3 + $0x18] sm:$0xff] }
  0xf0   :  { %v857_v44 = vpop.f32.mrf.mxu3  ;;  %v881_v49 = vpop.f32.mrf.mxu0 }
  0xf1   :  { %v882_v50 = vadd.f32 %v881_v49, %v869_v43  ;;  %v2145_v43 = vld [vmem:[%s3276_s3 + $0x58] sm:$0xff]  ;;  %v2136_v44 = vld [vmem:[%s3276_s3 + $0x10] sm:$0xff] }
  0xf2   :  { %v2144_v49 = vld [vmem:[%s3276_s3 + $0x50] sm:$0xff] }
  0xf3   :  { %v870_v52 = vpop.f32.mrf.mxu2  ;;  %v886_v55 = vpack.c.bf16 %v882_v50, %v882_v50 }
  0xf4   :  { %v2143_v52 = vld [vmem:[%s3276_s3 + $0x48] sm:$0xff] }
  0xf5   :  { %1068 = vmatmul.bf16.vlgmr.msrb.gmra.mxu3 %v886_v55  ;;  %1094 = vmatmul.bf16.vlgmr.msra.gmra.mxu2 %v886_v55  ;;  %v2134_v55 = vld [vmem:[%s3276_s3] sm:$0xff] }
  0xf6   :  { %1176 = vmatpush.bf16.msrb.mxu3 %v2988_v58  ;;  %1202 = vmatpush.bf16.msra.mxu2 %v3000_v63 }
  0xf8   :  { %v883_v56 = vpop.f32.mrf.mxu0 }
  0xf9   :  { %v2142_v56 = vld [vmem:[%s3276_s3 + $0x40] sm:$0xff] }
  0xfa   :  { %1177 = vmatpush.bf16.msrb.mxu3 %v3010_v4  ;;  %1203 = vmatpush.bf16.msra.mxu2 %v3013_v6 }
  0xfe   :  { %1178 = vmatpush.bf16.msrb.mxu3 %v3028_v5  ;;  %1204 = vmatpush.bf16.msra.mxu2 %v3033_v12 }
 0x102   :  { %1179 = vmatpush.bf16.msrb.mxu3 %v3052_v23  ;;  %1205 = vmatpush.bf16.msra.mxu2 %v3057_v26 }
 0x106   :  { %1180 = vmatpush.bf16.msrb.mxu3 %v3072_v40  ;;  %1206 = vmatpush.bf16.msra.mxu2 %v3077_v45 }
 0x10a   :  { %1181 = vmatpush.bf16.msrb.mxu3 %v3094_v54  ;;  %1207 = vmatpush.bf16.msra.mxu2 %v3101_v57 }
 0x10e   :  { %1182 = vmatpush.bf16.msrb.mxu3 %v3114_v53  ;;  %1208 = vmatpush.bf16.msra.mxu2 %v3120_v46 }
 0x112   :  { %1183 = vmatpush.bf16.msrb.mxu3 %v3134_v13  ;;  %1209 = vmatpush.bf16.msra.mxu2 %v3140_v16 }
 0x147   :  { %v1056_v59 = vpop.f32.mrf.mxu1  ;;  %v1082_v61 = vpop.f32.mrf.mxu0 }
 0x14f   :  { %v1058_v62 = vpop.f32.mrf.mxu1  ;;  %v1084_v0 = vpop.f32.mrf.mxu0 }
 0x178   :  { %v1069_v1 = vpop.f32.mrf.mxu3  ;;  %v1095_v2 = vpop.f32.mrf.mxu2 }
 0x179   :  { %v1070_v3 = vadd.f32 %v1069_v1, %v1056_v59  ;;  %v1096_v60 = vadd.f32 %v1095_v2, %v1082_v61 }
 0x17b   :  { %v1099_v41 = vmul.f32 %v1070_v3, %v3081_v48  ;;  %v1100_v8 = vmul.f32 %v1096_v60, %v882_v50  ;;  %v2135_v50 = vld [vmem:[%s3276_s3 + $0x8] sm:$0xff] }
 0x17d   :  { %v1101_v11 = vadd.f32 %v1099_v41, %v1070_v3  ;;  %v1102_v15 = vadd.f32 %v1100_v8, %v1096_v60 }
 0x17f   :  { %v1103_v17 = vpack.c.bf16 %v1101_v11, %v1101_v11  ;;  %v1104_v19 = vpack.c.bf16 %v1102_v15, %v1102_v15 }
 0x180   :  { %v1071_v20 = vpop.f32.mrf.mxu3  ;;  %v1097_v24 = vpop.f32.mrf.mxu2 }
 0x181   :  { %1113 = vmatmul.bf16.vlgmr.msra.gmra.mxu1 %v1103_v17  ;;  %1126 = vmatmul.bf16.vlgmr.msra.gmra.mxu3 %v1104_v19 }
 0x182   :  { %1139 = vmatmul.bf16.vlgmr.msrb.gmra.mxu0 %v1103_v17  ;;  %1152 = vmatmul.bf16.vlgmr.msrb.gmra.mxu2 %v1104_v19 }
 0x183   :  { %1221 = vmatpush.bf16.msra.mxu1 %v2842_v34  ;;  %1234 = vmatpush.bf16.msra.mxu3 %v2988_v58 }
 0x184   :  { %1247 = vmatpush.bf16.msrb.mxu0 %v2853_v7  ;;  %1260 = vmatpush.bf16.msrb.mxu2 %v3000_v63  ;;  %v2149_v63 = vld [vmem:[%s3276_s3 + $0x78] sm:$0xff] }
 0x187   :  { %1222 = vmatpush.bf16.msra.mxu1 %v2862_v9  ;;  %1235 = vmatpush.bf16.msra.mxu3 %v3010_v4  ;;  %v2140_v4 = vld [vmem:[%s3276_s3 + $0x30] sm:$0xff] }
 0x188   :  { %1248 = vmatpush.bf16.msrb.mxu0 %v2865_v10  ;;  %1261 = vmatpush.bf16.msrb.mxu2 %v3013_v6  ;;  %v2148_v6 = vld [vmem:[%s3276_s3 + $0x70] sm:$0xff] }
 0x18b   :  { %1223 = vmatpush.bf16.msra.mxu1 %v2878_v14  ;;  %1236 = vmatpush.bf16.msra.mxu3 %v3028_v5  ;;  %v2139_v5 = vld [vmem:[%s3276_s3 + $0x28] sm:$0xff] }
 0x18c   :  { %1249 = vmatpush.bf16.msrb.mxu0 %v2889_v18  ;;  %1262 = vmatpush.bf16.msrb.mxu2 %v3033_v12  ;;  %v2147_v12 = vld [vmem:[%s3276_s3 + $0x68] sm:$0xff] }
 0x18f   :  { %1224 = vmatpush.bf16.msra.mxu1 %v2898_v21  ;;  %1237 = vmatpush.bf16.msra.mxu3 %v3052_v23  ;;  %v2138_v23 = vld [vmem:[%s3276_s3 + $0x20] sm:$0xff] }
 0x190   :  { %1250 = vmatpush.bf16.msrb.mxu0 %v2901_v22  ;;  %1263 = vmatpush.bf16.msrb.mxu2 %v3057_v26  ;;  %v2146_v26 = vld [vmem:[%s3276_s3 + $0x60] sm:$0xff] }
 0x193   :  { %1225 = vmatpush.bf16.msra.mxu1 %v2916_v27  ;;  %1238 = vmatpush.bf16.msra.mxu3 %v3072_v40 }
 0x194   :  { %1251 = vmatpush.bf16.msrb.mxu0 %v2919_v28  ;;  %1264 = vmatpush.bf16.msrb.mxu2 %v3077_v45 }
 0x197   :  { %1226 = vmatpush.bf16.msra.mxu1 %v2934_v33  ;;  %1239 = vmatpush.bf16.msra.mxu3 %v3094_v54 }
 0x198   :  { %1252 = vmatpush.bf16.msrb.mxu0 %v2937_v35  ;;  %1265 = vmatpush.bf16.msrb.mxu2 %v3101_v57 }
 0x19b   :  { %1227 = vmatpush.bf16.msra.mxu1 %v2950_v39  ;;  %1240 = vmatpush.bf16.msra.mxu3 %v3114_v53 }
 0x19c   :  { %1253 = vmatpush.bf16.msrb.mxu0 %v2955_v42  ;;  %1266 = vmatpush.bf16.msrb.mxu2 %v3120_v46 }
 0x19f   :  { %1228 = vmatpush.bf16.msra.mxu1 %v2968_v47  ;;  %1241 = vmatpush.bf16.msra.mxu3 %v3134_v13 }
 0x1a0   :  { %1254 = vmatpush.bf16.msrb.mxu0 %v2973_v51  ;;  %1267 = vmatpush.bf16.msrb.mxu2 %v3140_v16  ;;  %v2141_v51 = vld [vmem:[%s3276_s3 + $0x38] sm:$0xff]  ;;  %s2177_s3 = smov [#allocation2]  }
 0x1a1   :  { %s1407_s10 = sshll.u32 %s2177_s3, 4  ;;  %s1408_s10 = int_to_ptr.vmem [resolvable:$true] %s1407_s10 }
 0x1fe   :  { %v1114_v34 = vpop.f32.mrf.mxu1 }
 0x1ff   :  { %v1140_v7 = vpop.f32.mrf.mxu0 }
 0x204   :  { %v1127_v9 = vpop.f32.mrf.mxu3 }
 0x205   :  { %v1128_v10 = vadd.f32 %v1127_v9, %v1114_v34  ;;  %v1153_v14 = vpop.f32.mrf.mxu2 }
 0x206   :  { %v1154_v18 = vadd.f32 %v1153_v14, %v1140_v7  ;;  %v1116_v21 = vpop.f32.mrf.mxu1 }
 0x207   :  { %v1157_v22 = vmul.f32 %v1128_v10, %v1101_v11  ;;  %v1142_v27 = vpop.f32.mrf.mxu0 }
 0x208   :  { %v1158_v28 = vmul.f32 %v1154_v18, %v1102_v15 }
 0x209   :  { %v1159_v33 = vadd.f32 %v1157_v22, %v1128_v10 }
 0x20a   :  { %v1160_v35 = vadd.f32 %v1158_v28, %v1154_v18 }
 0x20b   :  { %v1161_v39 = vpack.c.bf16 %v1159_v33, %v1159_v33 }
 0x20c   :  { %v1162_v42 = vpack.c.bf16 %v1160_v35, %v1160_v35  ;;  %v1129_v47 = vpop.f32.mrf.mxu3 }
 0x20d   :  { %v1155_v58 = vpop.f32.mrf.mxu2  ;;  %1171 = vmatmul.bf16.vlgmr.msrb.gmra.mxu1 %v1161_v39  ;;  %1197 = vmatmul.bf16.vlgmr.msra.gmra.mxu0 %v1161_v39 }
 0x20e   :  { %1184 = vmatmul.bf16.vlgmr.msrb.gmra.mxu3 %v1162_v42  ;;  %1210 = vmatmul.bf16.vlgmr.msra.gmra.mxu2 %v1162_v42 }
 0x20f   :  { %1375 = vmatpush.bf16.msrb.mxu1 %v2141_v51  ;;  %1388 = vmatpush.bf16.msrb.mxu3 %v2149_v63 }
 0x213   :  { %1376 = vmatpush.bf16.msrb.mxu1 %v2140_v4  ;;  %1389 = vmatpush.bf16.msrb.mxu3 %v2148_v6 }
 0x217   :  { %1377 = vmatpush.bf16.msrb.mxu1 %v2139_v5  ;;  %1390 = vmatpush.bf16.msrb.mxu3 %v2147_v12 }
 0x21b   :  { %1378 = vmatpush.bf16.msrb.mxu1 %v2138_v23  ;;  %1391 = vmatpush.bf16.msrb.mxu3 %v2146_v26 }
 0x21f   :  { %1379 = vmatpush.bf16.msrb.mxu1 %v2137_v38  ;;  %1392 = vmatpush.bf16.msrb.mxu3 %v2145_v43 }
 0x223   :  { %1380 = vmatpush.bf16.msrb.mxu1 %v2136_v44  ;;  %1393 = vmatpush.bf16.msrb.mxu3 %v2144_v49 }
 0x227   :  { %1381 = vmatpush.bf16.msrb.mxu1 %v2135_v50  ;;  %1394 = vmatpush.bf16.msrb.mxu3 %v2143_v52 }
 0x22b   :  { %1382 = vmatpush.bf16.msrb.mxu1 %v2134_v55  ;;  %1395 = vmatpush.bf16.msrb.mxu3 %v2142_v56 }
 0x28a   :  { %v1172_v40 = vpop.f32.mrf.mxu1  ;;  %v1198_v45 = vpop.f32.mrf.mxu0 }
 0x291   :  { %v1185_v48 = vpop.f32.mrf.mxu3  ;;  %v1211_v54 = vpop.f32.mrf.mxu2 }
 0x292   :  { %v1186_v57 = vadd.f32 %v1185_v48, %v1172_v40  ;;  %v1212_v53 = vadd.f32 %v1211_v54, %v1198_v45  ;;  %v1174_v46 = vpop.f32.mrf.mxu1  ;;  %v1200_v13 = vpop.f32.mrf.mxu0 }
 0x294   :  { %v1215_v16 = vmul.f32 %v1186_v57, %v1159_v33  ;;  %v1216_v25 = vmul.f32 %v1212_v53, %v1160_v35 }
 0x296   :  { %v1217_v29 = vadd.f32 %v1215_v16, %v1186_v57  ;;  %v1218_v30 = vadd.f32 %v1216_v25, %v1212_v53 }
 0x298   :  { %v1219_v31 = vpack.c.bf16 %v1217_v29, %v1217_v29  ;;  %v1220_v32 = vpack.c.bf16 %v1218_v30, %v1218_v30 }
 0x299   :  { %v1187_v36 = vpop.f32.mrf.mxu3  ;;  %v1213_v37 = vpop.f32.mrf.mxu2 }
 0x29a   :  { %1229 = vmatmul.bf16.vlgmr.msra.gmra.mxu1 %v1219_v31  ;;  %1242 = vmatmul.bf16.vlgmr.msra.gmra.mxu3 %v1220_v32 }
 0x29b   :  { %1255 = vmatmul.bf16.vlgmr.msrb.gmra.mxu0 %v1219_v31  ;;  %1268 = vmatmul.bf16.vlgmr.msrb.gmra.mxu2 %v1220_v32 }
 0x317   :  { %v1230_v59 = vpop.f32.mrf.mxu1 }
 0x318   :  { %v1256_v61 = vpop.f32.mrf.mxu0 }
 0x31d   :  { %v1243_v62 = vpop.f32.mrf.mxu3 }
 0x31e   :  { %v1244_v0 = vadd.f32 %v1243_v62, %v1230_v59  ;;  %v1269_v1 = vpop.f32.mrf.mxu2 }
 0x31f   :  { %v1270_v2 = vadd.f32 %v1269_v1, %v1256_v61  ;;  %v1232_v3 = vpop.f32.mrf.mxu1 }
 0x320   :  { %v1273_v60 = vmul.f32 %v1244_v0, %v1217_v29  ;;  %v1258_v41 = vpop.f32.mrf.mxu0 }
 0x321   :  { %v1274_v8 = vmul.f32 %v1270_v2, %v1218_v30 }
 0x322   :  { %v1275_v11 = vadd.f32 %v1273_v60, %v1244_v0 }
 0x323   :  { %v1276_v15 = vadd.f32 %v1274_v8, %v1270_v2 }
 0x324   :  { %v1277_v17 = vpack.c.bf16 %v1275_v11, %v1275_v11 }
 0x325   :  { %v1278_v19 = vpack.c.bf16 %v1276_v15, %v1276_v15  ;;  %v1245_v20 = vpop.f32.mrf.mxu3 }
 0x326   :  { %v1271_v24 = vpop.f32.mrf.mxu2  ;;  %1383 = vmatmul.bf16.vlgmr.msrb.gmra.mxu1 %v1277_v17 }
 0x327   :  { %1396 = vmatmul.bf16.vlgmr.msrb.gmra.mxu3 %v1278_v19 }
 0x3a3   :  { %v1384_v34 = vpop.f32.mrf.mxu1 }
 0x3aa   :  { %v1397_v7 = vpop.f32.mrf.mxu3 }
 0x3ab   :  { %v1398_v9 = vadd.f32 %v1397_v7, %v1384_v34  ;;  %v1386_v10 = vpop.f32.mrf.mxu1 }
 0x3ad   :  { %1401 = vst [vmem:[#allocation2] sm:$0xff] %v1398_v9 }
 0x3ae   :  { %1412 = dma.vmem_to_hbm [thread:$0]  %s1408_s10, 128, %s1410_s13, [#allocation3]  }
 0x3b2   :  { %v1399_v14 = vpop.f32.mrf.mxu3 }
 0x3b3   :  { %2175 = dma.done.wait [#allocation3], 128  }
 0x3b4   :  { %2176 = vsyncadd [#allocation3], 4294967168 }
 0x3b5   :  { %1417 = vsyncpa [#allocation3], 1 }

</bundles_post_ra>
